<compile_context>
chip_gen: v7x
topology: tpu7x:2x2x1
jax: 0.10.0
libtpu: 0.0.40
codegen_flags: <defaults>
</compile_context>

<pallas_src>
import functools

import jax
import jax.numpy as jnp
from jax.experimental import pallas as pl
from jax.experimental.pallas import tpu as pltpu


def _sigmoid(x):
    # explicit logistic (exp is a guaranteed EUP lowering inside Pallas; also used by
    # the pure-JAX reference so the check below mirrors the kernel's math exactly)
    return 1.0 / (1.0 + jnp.exp(-x))


def _masked_softmax(score, mask):
    # score, mask: [B, T].  Finite sentinel (-1e30) instead of -inf so fully-masked
    # rows produce all-zero weights instead of NaN (documented divergence).
    score = jnp.where(mask, jnp.float32(-1e30), score)
    m = jnp.max(score, axis=1, keepdims=True)
    e = jnp.exp(score - m)
    s = e / jnp.sum(e, axis=1, keepdims=True)
    return jnp.where(mask, jnp.float32(0.0), s)


# ----------------------------------------------------------------------------
# Fused Pallas kernel: dual attention + LSTM stack + output projection
# ----------------------------------------------------------------------------

def _fused_decoder_kernel(idx_len_ref, seq_ref, ctx_extra_ref, att_w_ref,
                          lstm_w_ref, lstm_b_ref, lin_w_ref, hc_in_ref,
                          out_ref, hc_out_ref, *,
                          T_t, T_o, ctx_dim, in_dims, hidden_dim,
                          output_dim, apply_tanh):
    B = seq_ref.shape[0]
    T_all = T_t + T_o
    D = seq_ref.shape[2]
    H = hidden_dim
    num_layers = len(in_dims)
    in_max = max(in_dims)
    n_slots = hc_in_ref.shape[2]

    # ---------------- dual attention (shared attention_theirs weights) -------------
    seq = seq_ref[...]                                         # [B, T_all, D] bf16
    wh = att_w_ref[:D, :]                                      # [D, A] bf16
    wc = att_w_ref[D:D + ctx_dim, :]                           # [C, A] bf16
    wv = att_w_ref[D + ctx_dim:D + ctx_dim + 1, :].astype(jnp.float32)   # [1, A]

    # one flat matmul over BOTH sequences (weights pushed once); the reshapes only
    # merge / split leading dims, so they are layout-preserving.
    h_att = jnp.dot(seq.reshape(B * T_all, D), wh,
                    preferred_element_type=jnp.float32).reshape(B, T_all, -1)
    ctx = ctx_extra_ref[:, :ctx_dim]                           # [B, C] bf16
    c_att = jnp.dot(ctx, wc, preferred_element_type=jnp.float32)          # [B, A]
    act = jnp.tanh(h_att + c_att[:, None, :])                  # f32 (VPU/EUP)
    score = jnp.sum(act * wv, axis=-1)                         # [B, T_all] lane reduce

    len_t = idx_len_ref[:, 1:2]                                # [B, 1] int32
    len_o = idx_len_ref[:, 2:3]
    mask_t = jax.lax.broadcasted_iota(jnp.int32, (B, T_t), 1) >= len_t
    mask_o = jax.lax.broadcasted_iota(jnp.int32, (B, T_o), 1) >= len_o

    # Reference pairing: scores_ours over THEIRS sequence, scores_theirs over OURS.
    s_ours = _masked_softmax(score[:, :T_t], mask_t)
    s_theirs = _masked_softmax(score[:, T_t:], mask_o)

    # attention apply on VPU + XLU (avoids 4 tiny serial MXU matvec round-trips)
    att_ours = jnp.sum(s_ours[:, :, None] * seq[:, :T_t, :].astype(jnp.float32), axis=1)
    att_theirs = jnp.sum(s_theirs[:, :, None] * seq[:, T_t:, :].astype(jnp.float32), axis=1)

    extra = ctx_extra_ref[:, ctx_dim:].astype(jnp.float32)
    x = jnp.concatenate([att_ours, att_theirs, extra], axis=-1)   # [B, decoder_in] f32

    # ---------------- LSTM stack: one fused [x||h] @ [W_ih;W_hh] per layer ----------
    hid = idx_len_ref[:, 0:1]                                  # [B, 1] int32
    slot_ids = jax.lax.broadcasted_iota(jnp.int32, (B, n_slots), 1)
    onehot = (slot_ids == hid).astype(jnp.float32)             # [B, n_slots], layer-invariant
    # rows of the state buffers that get updated (assumes unique, in-range hidden_idx,
    # same requirement as torch index_copy for deterministic results)
    sel = jnp.sum(onehot[:, :, None], axis=0) > 0.0            # [n_slots, 1] bool

    for l in range(num_layers):
        h_all = hc_in_ref[l, 0]                                # [n_slots, H] f32
        c_all = hc_in_ref[l, 1]
        # vectorized one-hot gather h[hidden_idx], c[hidden_idx] (no dynamic slices)
        h_in = jnp.sum(onehot[:, :, None] * h_all[None, :, :], axis=1)   # [B, H]
        c_in = jnp.sum(onehot[:, :, None] * c_all[None, :, :], axis=1)

        parts = [x]
        if in_dims[l] < in_max:        # zero-pad to the packed weight row count
            parts.append(jnp.zeros((B, in_max - in_dims[l]), jnp.float32))
        parts.append(h_in)
        xh = jnp.concatenate(parts, axis=-1).astype(jnp.bfloat16)        # [B, in_max+H]

        gates = jnp.dot(xh, lstm_w_ref[l],
                        preferred_element_type=jnp.float32) + lstm_b_ref[l]   # [B, 4H]
        i_g = _sigmoid(gates[:, 0 * H:1 * H])
        f_g = _sigmoid(gates[:, 1 * H:2 * H])
        g_g = jnp.tanh(gates[:, 2 * H:3 * H])
        o_g = _sigmoid(gates[:, 3 * H:4 * H])
        c_new = f_g * c_in + i_g * g_g
        h_new = o_g * jnp.tanh(c_new)

        # vectorized one-hot scatter back into the aliased state buffer
        scat_h = jnp.sum(onehot[:, :, None] * h_new[:, None, :], axis=0)  # [n_slots, H]
        scat_c = jnp.sum(onehot[:, :, None] * c_new[:, None, :], axis=0)
        hc_out_ref[l, 0] = jnp.where(sel, scat_h, h_all)
        hc_out_ref[l, 1] = jnp.where(sel, scat_c, c_all)

        x = h_new
        # TODO(synk): training-mode dropout between layers (identity in eval/inference).

    # ---------------- output projection (bias folded as a ones column) --------------
    xl = jnp.concatenate([x, jnp.ones((B, 1), jnp.float32)], axis=-1).astype(jnp.bfloat16)
    y = jnp.dot(xl, lin_w_ref[...], preferred_element_type=jnp.float32)
    if apply_tanh:
        y = jnp.tanh(y)

    # one lane-dense [B, 128k] slab: [ out | scores_ours | scores_theirs | pad ]
    pad = out_ref.shape[1] - (output_dim + T_t + T_o)
    slab = [y, s_ours, s_theirs]
    if pad:
        slab.append(jnp.zeros((B, pad), jnp.float32))
    out_ref[...] = jnp.concatenate(slab, axis=-1)


# ----------------------------------------------------------------------------
# Forward wrapper: packs inputs, one pallas_call for the whole module
# ----------------------------------------------------------------------------

def dual_attention_decoder_forward(params,
                                   encoded_seq_ours, encoded_seq_ours_len,
                                   encoded_seq_theirs, encoded_seq_theirs_len,
                                   attention_context, additional_decoder_input,
                                   hidden, hidden_idx, *, apply_tanh=False):
    num_layers = len(params['rnn'])
    if len(hidden) != num_layers:
        raise Exception('Number of hidden tensors must equal the number of RNN layers!')

    B, T_t, _ = encoded_seq_theirs.shape
    _, T_o, _ = encoded_seq_ours.shape
    C = attention_context.shape[1]
    H = params['rnn'][0][1].shape[0]
    output_dim = params['linear'][0].shape[1]

    # Reference uses attention_theirs for BOTH attention calls (attention_ours unused).
    Wh, Wc, Wv = params['attention_theirs']
    W_lin, b_lin = params['linear']
    extra = jnp.concatenate(list(additional_decoder_input), axis=-1)

    # ---- pack inputs: few large DMAs, bf16 for everything that feeds the MXU ----
    idx_len = jnp.stack([jnp.asarray(hidden_idx, jnp.int32),
                         jnp.asarray(encoded_seq_theirs_len, jnp.int32),
                         jnp.asarray(encoded_seq_ours_len, jnp.int32)], axis=1)  # [B,3]
    seq_all = jnp.concatenate([encoded_seq_theirs, encoded_seq_ours],
                              axis=1).astype(jnp.bfloat16)                # [B,T_t+T_o,D]
    ctx_extra = jnp.concatenate([attention_context, extra],
                                axis=-1).astype(jnp.bfloat16)             # [B, C+E]
    att_w = jnp.concatenate([Wh, Wc, Wv], axis=0).astype(jnp.bfloat16)    # [D+C+1, A]

    in_dims = tuple(int(w_ih.shape[0]) for (w_ih, _, _) in params['rnn'])
    in_max = max(in_dims)
    lstm_w, lstm_b = [], []
    for (w_ih, w_hh, b) in params['rnn']:
        row_pad = in_max - w_ih.shape[0]
        if row_pad:
            w_ih = jnp.pad(w_ih, ((0, row_pad), (0, 0)))
        lstm_w.append(jnp.concatenate([w_ih, w_hh], axis=0))
        lstm_b.append(b)
    lstm_w = jnp.stack(lstm_w).astype(jnp.bfloat16)                       # [L,in_max+H,4H]
    lstm_b = jnp.stack(lstm_b)                                            # [L,1,4H] f32
    lin_w = jnp.concatenate([W_lin, b_lin], axis=0).astype(jnp.bfloat16)  # [H+1, out]
    hc = jnp.stack([jnp.stack([h, c]) for (h, c) in hidden])              # [L,2,slots,H]

    slab_cols = output_dim + T_t + T_o
    slab_pad = pl.cdiv(slab_cols, 128) * 128                              # lane-dense out

    vmem = pl.BlockSpec(memory_space=pltpu.MemorySpace.VMEM)
    kernel = functools.partial(_fused_decoder_kernel, T_t=T_t, T_o=T_o,
                               ctx_dim=C, in_dims=in_dims, hidden_dim=H,
                               output_dim=output_dim, apply_tanh=apply_tanh)

    slab, hc_out = pl.pallas_call(
        kernel,
        out_shape=(jax.ShapeDtypeStruct((B, slab_pad), jnp.float32),
                   jax.ShapeDtypeStruct(hc.shape, hc.dtype)),
        in_specs=[vmem] * 8,
        out_specs=(vmem, vmem),
        input_output_aliases={7: 1},   # hidden/cell buffer updated in place
        compiler_params=pltpu.CompilerParams(vmem_limit_bytes=32 * 1024 * 1024),
    )(idx_len, seq_all, ctx_extra, att_w, lstm_w, lstm_b, lin_w, hc)

    out = slab[:, :output_dim]
    scores_ours = slab[:, output_dim:output_dim + T_t][:, :, None]
    scores_theirs = slab[:, output_dim + T_t:output_dim + T_t + T_o][:, :, None]
    new_hidden = [(hc_out[l, 0], hc_out[l, 1]) for l in range(num_layers)]
    return out, new_hidden, scores_ours, scores_theirs


# ----------------------------------------------------------------------------
# Deterministic parameter init (shapes follow the module __init__; weights stored
# transposed [in, out]; LSTM gates concatenated along the output dim in (i,f,g,o)
# order like PyTorch; bias = b_ih + b_hh)
# ----------------------------------------------------------------------------

def init_params(key, attention_in_dim, attention_context_dim, attention_dim,
                decoder_in_dim, output_dim, hidden_dim, num_layers):
    keys = iter(jax.random.split(key, 8 + 3 * num_layers))

    def rnd(shape):
        return 0.1 * jax.random.normal(next(keys), shape, dtype=jnp.float32)

    def attention_params():
        return (rnd((attention_in_dim, attention_dim)),        # W_h (transposed)
                rnd((attention_context_dim, attention_dim)),   # W_c
                rnd((1, attention_dim)))                       # W_v (row vector)

    params = {'attention_ours': attention_params(),   # created but unused (reference)
              'attention_theirs': attention_params()}

    rnn = []
    in_dim = decoder_in_dim
    for _ in range(num_layers):
        rnn.append((rnd((in_dim, 4 * hidden_dim)),     # W_ih^T, gates (i,f,g,o)
                    rnd((hidden_dim, 4 * hidden_dim)), # W_hh^T
                    rnd((1, 4 * hidden_dim))))         # b_ih + b_hh
        in_dim = hidden_dim
    params['rnn'] = rnn
    params['linear'] = (rnd((hidden_dim, output_dim)), rnd((1, output_dim)))
    return params


# ----------------------------------------------------------------------------
# Pure-JAX reference with mirrored precision (bf16 matmul operands, f32 accumulate)
# ----------------------------------------------------------------------------

def _reference_forward(params, seq_ours, len_ours, seq_theirs, len_theirs,
                       ctx, extra_list, hidden, hidden_idx, apply_tanh):
    bf = lambda a: a.astype(jnp.bfloat16)
    Wh, Wc, Wv = params['attention_theirs']
    W_lin, b_lin = params['linear']
    extra = jnp.concatenate(list(extra_list), axis=-1)

    def attend(hist, lens):
        T = hist.shape[1]
        h_att = jnp.einsum('btd,da->bta', bf(hist), bf(Wh),
                           preferred_element_type=jnp.float32)
        c_att = jnp.dot(bf(ctx), bf(Wc), preferred_element_type=jnp.float32)
        act = jnp.tanh(h_att + c_att[:, None, :])
        score = jnp.sum(act * bf(Wv).astype(jnp.float32), axis=-1)
        mask = jnp.arange(T)[None, :] >= lens[:, None]
        score = jnp.where(mask, -1e30, score)
        s = jnp.exp(score - jnp.max(score, axis=1, keepdims=True))
        s = s / jnp.sum(s, axis=1, keepdims=True)
        s = jnp.where(mask, 0.0, s)
        att = jnp.sum(s[:, :, None] * bf(hist).astype(jnp.float32), axis=1)
        return att, s

    att_ours, s_ours = attend(seq_theirs, len_theirs)
    att_theirs, s_theirs = attend(seq_ours, len_ours)
    x = jnp.concatenate([att_ours, att_theirs, bf(extra).astype(jnp.float32)], axis=-1)

    H = params['rnn'][0][1].shape[0]
    new_hidden = []
    for (W_ih, W_hh, b), (h_all, c_all) in zip(params['rnn'], hidden):
        h_in, c_in = h_all[hidden_idx], c_all[hidden_idx]
        gates = (jnp.dot(bf(jnp.concatenate([x, h_in], axis=-1)),
                         bf(jnp.concatenate([W_ih, W_hh], axis=0)),
                         preferred_element_type=jnp.float32) + b)
        i_g = _sigmoid(gates[:, 0 * H:1 * H])
        f_g = _sigmoid(gates[:, 1 * H:2 * H])
        g_g = jnp.tanh(gates[:, 2 * H:3 * H])
        o_g = _sigmoid(gates[:, 3 * H:4 * H])
        c_new = f_g * c_in + i_g * g_g
        h_new = o_g * jnp.tanh(c_new)
        new_hidden.append((h_all.at[hidden_idx].set(h_new),
                           c_all.at[hidden_idx].set(c_new)))
        x = h_new

    xl = jnp.concatenate([x, jnp.ones((x.shape[0], 1), jnp.float32)], axis=-1)
    y = jnp.dot(bf(xl), bf(jnp.concatenate([W_lin, b_lin], axis=0)),
                preferred_element_type=jnp.float32)
    if apply_tanh:
        y = jnp.tanh(y)
    return y, new_hidden, s_ours[:, :, None], s_theirs[:, :, None]


# ----------------------------------------------------------------------------
# Example run
# ----------------------------------------------------------------------------

if __name__ == "__main__":
    B, T = 2, 8
    attention_in_dim = 16
    attention_context_dim = 8
    attention_dim = 16
    extra_dim = 8
    decoder_in_dim = 2 * attention_in_dim + extra_dim   # 40
    hidden_dim = 32
    output_dim = 8
    num_layers = 2
    n_slots = 4

    key = jax.random.PRNGKey(0)
    kp, k1, k2, k3, k4, k5 = jax.random.split(key, 6)

    params = init_params(kp, attention_in_dim, attention_context_dim, attention_dim,
                         decoder_in_dim, output_dim, hidden_dim, num_layers)

    encoded_seq_ours = jax.random.normal(k1, (B, T, attention_in_dim), jnp.float32)
    encoded_seq_theirs = jax.random.normal(k2, (B, T, attention_in_dim), jnp.float32)
    encoded_seq_ours_len = jnp.array([8, 5], jnp.int32)
    encoded_seq_theirs_len = jnp.array([6, 8], jnp.int32)
    attention_context = jax.random.normal(k3, (B, attention_context_dim), jnp.float32)
    additional_decoder_input = [jax.random.normal(k4, (B, extra_dim), jnp.float32)]

    hk = jax.random.split(k5, 2 * num_layers)
    hidden = [(jax.random.normal(hk[2 * i], (n_slots, hidden_dim), jnp.float32),
               jax.random.normal(hk[2 * i + 1], (n_slots, hidden_dim), jnp.float32))
              for i in range(num_layers)]
    hidden_idx = jnp.array([0, 2], jnp.int32)

    # 'tanh' activation -> apply_tanh=True (static under jit).
    forward = jax.jit(functools.partial(dual_attention_decoder_forward, apply_tanh=True))

    out, new_hidden, scores_ours, scores_theirs = forward(
        params, encoded_seq_ours, encoded_seq_ours_len,
        encoded_seq_theirs, encoded_seq_theirs_len,
        attention_context, additional_decoder_input, hidden, hidden_idx)
    jax.block_until_ready((out, new_hidden, scores_ours, scores_theirs))

    # correctness check against a pure-JAX reference with mirrored matmul precision
    r_out, r_hidden, r_s_ours, r_s_theirs = _reference_forward(
        params, encoded_seq_ours, encoded_seq_ours_len,
        encoded_seq_theirs, encoded_seq_theirs_len,
        attention_context, additional_decoder_input, hidden, hidden_idx, True)

    tol = dict(atol=2e-2, rtol=0.0)
    assert out.shape == (B, output_dim)
    assert scores_ours.shape == (B, T, 1) and scores_theirs.shape == (B, T, 1)
    assert len(new_hidden) == num_layers and new_hidden[0][0].shape == (n_slots, hidden_dim)
    assert bool(jnp.allclose(out, r_out, **tol))
    assert bool(jnp.allclose(scores_ours, r_s_ours, **tol))
    assert bool(jnp.allclose(scores_theirs, r_s_theirs, **tol))
    for (h, c), (rh, rc) in zip(new_hidden, r_hidden):
        assert bool(jnp.allclose(h, rh, **tol)) and bool(jnp.allclose(c, rc, **tol))
    # untouched hidden rows pass through unchanged
    assert bool(jnp.allclose(new_hidden[0][0][1], hidden[0][0][1]))
    # attention weights form a distribution over the unmasked positions
    assert bool(jnp.allclose(jnp.sum(scores_ours[:, :, 0], axis=1), 1.0, atol=1e-3))
    assert bool(jnp.allclose(jnp.sum(scores_theirs[:, :, 0], axis=1), 1.0, atol=1e-3))

    print("KERNEL_OK")
</pallas_src>

<mosaic_0001>
module attributes {stable_mosaic.version = 11 : i64} {
  func.func @_fused_decoder_kernel(%arg0: memref<2x3xi32, #tpu.memory_space<vmem>>, %arg1: memref<2x16x16xbf16, #tpu.memory_space<vmem>>, %arg2: memref<2x16xbf16, #tpu.memory_space<vmem>>, %arg3: memref<25x16xbf16, #tpu.memory_space<vmem>>, %arg4: memref<2x72x128xbf16, #tpu.memory_space<vmem>>, %arg5: memref<2x1x128xf32, #tpu.memory_space<vmem>>, %arg6: memref<33x8xbf16, #tpu.memory_space<vmem>>, %arg7: memref<2x2x4x32xf32, #tpu.memory_space<vmem>>, %arg8: memref<2x128xf32, #tpu.memory_space<vmem>>, %arg9: memref<2x2x4x32xf32, #tpu.memory_space<vmem>>) attributes {dimension_semantics = [], scalar_prefetch = 0 : i64, scratch_operands = 0 : i64, tpu.core_type = #tpu.core_type<tc>} {
    %c0 = arith.constant 0 : index
    %c0_0 = arith.constant 0 : index
    %c0_1 = arith.constant 0 : index
    %0 = vector.load %arg1[%c0, %c0_0, %c0_1] : memref<2x16x16xbf16, #tpu.memory_space<vmem>>, vector<2x16x16xbf16>
    %c0_2 = arith.constant 0 : index
    %c0_3 = arith.constant 0 : index
    %1 = vector.load %arg3[%c0_2, %c0_3] : memref<25x16xbf16, #tpu.memory_space<vmem>>, vector<16x16xbf16>
    %c16 = arith.constant 16 : index
    %c0_4 = arith.constant 0 : index
    %2 = vector.load %arg3[%c16, %c0_4] : memref<25x16xbf16, #tpu.memory_space<vmem>>, vector<8x16xbf16>
    %c24 = arith.constant 24 : index
    %c0_5 = arith.constant 0 : index
    %3 = vector.load %arg3[%c24, %c0_5] : memref<25x16xbf16, #tpu.memory_space<vmem>>, vector<1x16xbf16>
    %4 = arith.extf %3 : vector<1x16xbf16> to vector<1x16xf32>
    %5 = vector.shape_cast %0 : vector<2x16x16xbf16> to vector<32x16xbf16>
    %cst = arith.constant dense<0.000000e+00> : vector<32x16xf32>
    %6 = tpu.matmul %5, %1, %cst {dimension_numbers = #tpu.dot_dimension_numbers<[1], [0], [0], [1], [0, 0, 1, 1], [], []>} : vector<32x16xbf16>, vector<16x16xbf16>, vector<32x16xf32> -> vector<32x16xf32>
    %7 = vector.shape_cast %6 : vector<32x16xf32> to vector<2x16x16xf32>
    %c0_6 = arith.constant 0 : index
    %c0_7 = arith.constant 0 : index
    %8 = vector.load %arg2[%c0_6, %c0_7] : memref<2x16xbf16, #tpu.memory_space<vmem>>, vector<2x8xbf16>
    %cst_8 = arith.constant dense<0.000000e+00> : vector<2x16xf32>
    %9 = tpu.matmul %8, %2, %cst_8 {dimension_numbers = #tpu.dot_dimension_numbers<[1], [0], [0], [1], [0, 0, 1, 1], [], []>} : vector<2x8xbf16>, vector<8x16xbf16>, vector<2x16xf32> -> vector<2x16xf32>
    %10 = vector.shape_cast %9 : vector<2x16xf32> to vector<2x1x16xf32>
    %11 = vector.broadcast %10 : vector<2x1x16xf32> to vector<2x16x16xf32>
    %12 = arith.addf %7, %11 : vector<2x16x16xf32>
    %13 = math.tanh %12 : vector<2x16x16xf32>
    %14 = vector.shape_cast %4 : vector<1x16xf32> to vector<1x1x16xf32>
    %15 = vector.broadcast %14 : vector<1x1x16xf32> to vector<2x16x16xf32>
    %16 = arith.mulf %13, %15 : vector<2x16x16xf32>
    %cst_9 = arith.constant dense<0.000000e+00> : vector<2x16xf32>
    %17 = vector.multi_reduction <add>, %16, %cst_9 [2] : vector<2x16x16xf32> to vector<2x16xf32>
    %c0_10 = arith.constant 0 : index
    %c1 = arith.constant 1 : index
    %18 = vector.load %arg0[%c0_10, %c1] : memref<2x3xi32, #tpu.memory_space<vmem>>, vector<2x1xi32>
    %c0_11 = arith.constant 0 : index
    %c2 = arith.constant 2 : index
    %19 = vector.load %arg0[%c0_11, %c2] : memref<2x3xi32, #tpu.memory_space<vmem>>, vector<2x1xi32>
    %20 = tpu.iota {dimensions = array<i32: 1>} : vector<2x8xi32>
    %21 = vector.broadcast %18 : vector<2x1xi32> to vector<2x8xi32>
    %22 = arith.cmpi sge, %20, %21 : vector<2x8xi32>
    %23 = tpu.iota {dimensions = array<i32: 1>} : vector<2x8xi32>
    %24 = vector.broadcast %19 : vector<2x1xi32> to vector<2x8xi32>
    %25 = arith.cmpi sge, %23, %24 : vector<2x8xi32>
    %26 = vector.extract_strided_slice %17 {offsets = [0, 0], sizes = [2, 8], strides = [1, 1]} : vector<2x16xf32> to vector<2x8xf32>
    %cst_12 = arith.constant -1.000000e+30 : f32
    %27 = vector.broadcast %cst_12 : f32 to vector<2x8xf32>
    %28 = arith.select %22, %27, %26 : vector<2x8xi1>, vector<2x8xf32>
    %cst_13 = arith.constant dense<0xFF800000> : vector<2xf32>
    %29 = vector.multi_reduction <maximumf>, %28, %cst_13 [1] : vector<2x8xf32> to vector<2xf32>
    %30 = vector.shape_cast %29 : vector<2xf32> to vector<2x1xf32>
    %31 = vector.broadcast %30 : vector<2x1xf32> to vector<2x8xf32>
    %32 = arith.subf %28, %31 : vector<2x8xf32>
    %33 = math.exp %32 : vector<2x8xf32>
    %cst_14 = arith.constant dense<0.000000e+00> : vector<2xf32>
    %34 = vector.multi_reduction <add>, %33, %cst_14 [1] : vector<2x8xf32> to vector<2xf32>
    %35 = vector.shape_cast %34 : vector<2xf32> to vector<2x1xf32>
    %36 = vector.broadcast %35 : vector<2x1xf32> to vector<2x8xf32>
    %37 = arith.divf %33, %36 : vector<2x8xf32>
    %cst_15 = arith.constant 0.000000e+00 : f32
    %38 = vector.broadcast %cst_15 : f32 to vector<2x8xf32>
    %39 = arith.select %22, %38, %37 : vector<2x8xi1>, vector<2x8xf32>
    %40 = vector.extract_strided_slice %17 {offsets = [0, 8], sizes = [2, 8], strides = [1, 1]} : vector<2x16xf32> to vector<2x8xf32>
    %cst_16 = arith.constant -1.000000e+30 : f32
    %41 = vector.broadcast %cst_16 : f32 to vector<2x8xf32>
    %42 = arith.select %25, %41, %40 : vector<2x8xi1>, vector<2x8xf32>
    %cst_17 = arith.constant dense<0xFF800000> : vector<2xf32>
    %43 = vector.multi_reduction <maximumf>, %42, %cst_17 [1] : vector<2x8xf32> to vector<2xf32>
    %44 = vector.shape_cast %43 : vector<2xf32> to vector<2x1xf32>
    %45 = vector.broadcast %44 : vector<2x1xf32> to vector<2x8xf32>
    %46 = arith.subf %42, %45 : vector<2x8xf32>
    %47 = math.exp %46 : vector<2x8xf32>
    %cst_18 = arith.constant dense<0.000000e+00> : vector<2xf32>
    %48 = vector.multi_reduction <add>, %47, %cst_18 [1] : vector<2x8xf32> to vector<2xf32>
    %49 = vector.shape_cast %48 : vector<2xf32> to vector<2x1xf32>
    %50 = vector.broadcast %49 : vector<2x1xf32> to vector<2x8xf32>
    %51 = arith.divf %47, %50 : vector<2x8xf32>
    %cst_19 = arith.constant 0.000000e+00 : f32
    %52 = vector.broadcast %cst_19 : f32 to vector<2x8xf32>
    %53 = arith.select %25, %52, %51 : vector<2x8xi1>, vector<2x8xf32>
    %54 = vector.shape_cast %39 : vector<2x8xf32> to vector<2x8x1xf32>
    %55 = vector.extract_strided_slice %0 {offsets = [0, 0, 0], sizes = [2, 8, 16], strides = [1, 1, 1]} : vector<2x16x16xbf16> to vector<2x8x16xbf16>
    %56 = arith.extf %55 : vector<2x8x16xbf16> to vector<2x8x16xf32>
    %57 = vector.broadcast %54 : vector<2x8x1xf32> to vector<2x8x16xf32>
    %58 = arith.mulf %57, %56 : vector<2x8x16xf32>
    %cst_20 = arith.constant dense<0.000000e+00> : vector<2x16xf32>
    %59 = vector.multi_reduction <add>, %58, %cst_20 [1] : vector<2x8x16xf32> to vector<2x16xf32>
    %60 = vector.shape_cast %53 : vector<2x8xf32> to vector<2x8x1xf32>
    %61 = vector.extract_strided_slice %0 {offsets = [0, 8, 0], sizes = [2, 8, 16], strides = [1, 1, 1]} : vector<2x16x16xbf16> to vector<2x8x16xbf16>
    %62 = arith.extf %61 : vector<2x8x16xbf16> to vector<2x8x16xf32>
    %63 = vector.broadcast %60 : vector<2x8x1xf32> to vector<2x8x16xf32>
    %64 = arith.mulf %63, %62 : vector<2x8x16xf32>
    %cst_21 = arith.constant dense<0.000000e+00> : vector<2x16xf32>
    %65 = vector.multi_reduction <add>, %64, %cst_21 [1] : vector<2x8x16xf32> to vector<2x16xf32>
    %c0_22 = arith.constant 0 : index
    %c8 = arith.constant 8 : index
    %66 = vector.load %arg2[%c0_22, %c8] : memref<2x16xbf16, #tpu.memory_space<vmem>>, vector<2x8xbf16>
    %67 = arith.extf %66 : vector<2x8xbf16> to vector<2x8xf32>
    %68 = tpu.concatenate %59, %65, %67 in 1 : vector<2x16xf32>, vector<2x16xf32>, vector<2x8xf32> -> vector<2x40xf32>
    %c0_23 = arith.constant 0 : index
    %c0_24 = arith.constant 0 : index
    %69 = vector.load %arg0[%c0_23, %c0_24] : memref<2x3xi32, #tpu.memory_space<vmem>>, vector<2x1xi32>
    %70 = tpu.iota {dimensions = array<i32: 1>} : vector<2x4xi32>
    %71 = vector.broadcast %69 : vector<2x1xi32> to vector<2x4xi32>
    %72 = arith.cmpi eq, %70, %71 : vector<2x4xi32>
    %73 = arith.extui %72 : vector<2x4xi1> to vector<2x4xi32>
    %74 = arith.sitofp %73 : vector<2x4xi32> to vector<2x4xf32>
    %75 = vector.shape_cast %74 : vector<2x4xf32> to vector<2x4x1xf32>
    %cst_25 = arith.constant dense<0.000000e+00> : vector<4x1xf32>
    %76 = vector.multi_reduction <add>, %75, %cst_25 [0] : vector<2x4x1xf32> to vector<4x1xf32>
    %cst_26 = arith.constant 0.000000e+00 : f32
    %77 = vector.broadcast %cst_26 : f32 to vector<4x1xf32>
    %78 = arith.cmpf ogt, %76, %77 : vector<4x1xf32>
    %c0_27 = arith.constant 0 : index
    %c0_28 = arith.constant 0 : index
    %c0_29 = arith.constant 0 : index
    %c0_30 = arith.constant 0 : index
    %79 = vector.load %arg7[%c0_27, %c0_28, %c0_29, %c0_30] : memref<2x2x4x32xf32, #tpu.memory_space<vmem>>, vector<1x1x4x32xf32>
    %80 = vector.shape_cast %79 : vector<1x1x4x32xf32> to vector<4x32xf32>
    %c0_31 = arith.constant 0 : index
    %c1_32 = arith.constant 1 : index
    %c0_33 = arith.constant 0 : index
    %c0_34 = arith.constant 0 : index
    %81 = vector.load %arg7[%c0_31, %c1_32, %c0_33, %c0_34] : memref<2x2x4x32xf32, #tpu.memory_space<vmem>>, vector<1x1x4x32xf32>
    %82 = vector.shape_cast %81 : vector<1x1x4x32xf32> to vector<4x32xf32>
    %83 = vector.shape_cast %74 : vector<2x4xf32> to vector<2x4x1xf32>
    %84 = vector.shape_cast %80 : vector<4x32xf32> to vector<1x4x32xf32>
    %85 = vector.broadcast %83 : vector<2x4x1xf32> to vector<2x4x32xf32>
    %86 = vector.broadcast %84 : vector<1x4x32xf32> to vector<2x4x32xf32>
    %87 = arith.mulf %85, %86 : vector<2x4x32xf32>
    %cst_35 = arith.constant dense<0.000000e+00> : vector<2x32xf32>
    %88 = vector.multi_reduction <add>, %87, %cst_35 [1] : vector<2x4x32xf32> to vector<2x32xf32>
    %89 = vector.shape_cast %74 : vector<2x4xf32> to vector<2x4x1xf32>
    %90 = vector.shape_cast %82 : vector<4x32xf32> to vector<1x4x32xf32>
    %91 = vector.broadcast %89 : vector<2x4x1xf32> to vector<2x4x32xf32>
    %92 = vector.broadcast %90 : vector<1x4x32xf32> to vector<2x4x32xf32>
    %93 = arith.mulf %91, %92 : vector<2x4x32xf32>
    %cst_36 = arith.constant dense<0.000000e+00> : vector<2x32xf32>
    %94 = vector.multi_reduction <add>, %93, %cst_36 [1] : vector<2x4x32xf32> to vector<2x32xf32>
    %95 = tpu.concatenate %68, %88 in 1 : vector<2x40xf32>, vector<2x32xf32> -> vector<2x72xf32>
    %96 = arith.truncf %95 : vector<2x72xf32> to vector<2x72xbf16>
    %c0_37 = arith.constant 0 : index
    %c0_38 = arith.constant 0 : index
    %c0_39 = arith.constant 0 : index
    %97 = vector.load %arg4[%c0_37, %c0_38, %c0_39] : memref<2x72x128xbf16, #tpu.memory_space<vmem>>, vector<1x72x128xbf16>
    %98 = vector.shape_cast %97 : vector<1x72x128xbf16> to vector<72x128xbf16>
    %cst_40 = arith.constant dense<0.000000e+00> : vector<2x128xf32>
    %99 = tpu.matmul %96, %98, %cst_40 {dimension_numbers = #tpu.dot_dimension_numbers<[1], [0], [0], [1], [0, 0, 1, 1], [], []>} : vector<2x72xbf16>, vector<72x128xbf16>, vector<2x128xf32> -> vector<2x128xf32>
    %c0_41 = arith.constant 0 : index
    %c0_42 = arith.constant 0 : index
    %c0_43 = arith.constant 0 : index
    %100 = vector.load %arg5[%c0_41, %c0_42, %c0_43] : memref<2x1x128xf32, #tpu.memory_space<vmem>>, vector<1x1x128xf32>
    %101 = vector.shape_cast %100 : vector<1x1x128xf32> to vector<1x128xf32>
    %102 = vector.broadcast %101 : vector<1x128xf32> to vector<2x128xf32>
    %103 = arith.addf %99, %102 : vector<2x128xf32>
    %104 = vector.extract_strided_slice %103 {offsets = [0, 0], sizes = [2, 32], strides = [1, 1]} : vector<2x128xf32> to vector<2x32xf32>
    %cst_44 = arith.constant 0.000000e+00 : f32
    %105 = vector.broadcast %cst_44 : f32 to vector<2x32xf32>
    %106 = arith.subf %105, %104 : vector<2x32xf32>
    %107 = math.exp %106 : vector<2x32xf32>
    %cst_45 = arith.constant 1.000000e+00 : f32
    %108 = vector.broadcast %cst_45 : f32 to vector<2x32xf32>
    %109 = arith.addf %108, %107 : vector<2x32xf32>
    %cst_46 = arith.constant 1.000000e+00 : f32
    %110 = vector.broadcast %cst_46 : f32 to vector<2x32xf32>
    %111 = arith.divf %110, %109 : vector<2x32xf32>
    %112 = vector.extract_strided_slice %103 {offsets = [0, 32], sizes = [2, 32], strides = [1, 1]} : vector<2x128xf32> to vector<2x32xf32>
    %cst_47 = arith.constant 0.000000e+00 : f32
    %113 = vector.broadcast %cst_47 : f32 to vector<2x32xf32>
    %114 = arith.subf %113, %112 : vector<2x32xf32>
    %115 = math.exp %114 : vector<2x32xf32>
    %cst_48 = arith.constant 1.000000e+00 : f32
    %116 = vector.broadcast %cst_48 : f32 to vector<2x32xf32>
    %117 = arith.addf %116, %115 : vector<2x32xf32>
    %cst_49 = arith.constant 1.000000e+00 : f32
    %118 = vector.broadcast %cst_49 : f32 to vector<2x32xf32>
    %119 = arith.divf %118, %117 : vector<2x32xf32>
    %120 = vector.extract_strided_slice %103 {offsets = [0, 64], sizes = [2, 32], strides = [1, 1]} : vector<2x128xf32> to vector<2x32xf32>
    %121 = math.tanh %120 : vector<2x32xf32>
    %122 = vector.extract_strided_slice %103 {offsets = [0, 96], sizes = [2, 32], strides = [1, 1]} : vector<2x128xf32> to vector<2x32xf32>
    %cst_50 = arith.constant 0.000000e+00 : f32
    %123 = vector.broadcast %cst_50 : f32 to vector<2x32xf32>
    %124 = arith.subf %123, %122 : vector<2x32xf32>
    %125 = math.exp %124 : vector<2x32xf32>
    %cst_51 = arith.constant 1.000000e+00 : f32
    %126 = vector.broadcast %cst_51 : f32 to vector<2x32xf32>
    %127 = arith.addf %126, %125 : vector<2x32xf32>
    %cst_52 = arith.constant 1.000000e+00 : f32
    %128 = vector.broadcast %cst_52 : f32 to vector<2x32xf32>
    %129 = arith.divf %128, %127 : vector<2x32xf32>
    %130 = arith.mulf %119, %94 : vector<2x32xf32>
    %131 = arith.mulf %111, %121 : vector<2x32xf32>
    %132 = arith.addf %130, %131 : vector<2x32xf32>
    %133 = math.tanh %132 : vector<2x32xf32>
    %134 = arith.mulf %129, %133 : vector<2x32xf32>
    %135 = vector.shape_cast %74 : vector<2x4xf32> to vector<2x4x1xf32>
    %136 = vector.shape_cast %134 : vector<2x32xf32> to vector<2x1x32xf32>
    %137 = vector.broadcast %135 : vector<2x4x1xf32> to vector<2x4x32xf32>
    %138 = vector.broadcast %136 : vector<2x1x32xf32> to vector<2x4x32xf32>
    %139 = arith.mulf %137, %138 : vector<2x4x32xf32>
    %cst_53 = arith.constant dense<0.000000e+00> : vector<4x32xf32>
    %140 = vector.multi_reduction <add>, %139, %cst_53 [0] : vector<2x4x32xf32> to vector<4x32xf32>
    %141 = vector.shape_cast %74 : vector<2x4xf32> to vector<2x4x1xf32>
    %142 = vector.shape_cast %132 : vector<2x32xf32> to vector<2x1x32xf32>
    %143 = vector.broadcast %141 : vector<2x4x1xf32> to vector<2x4x32xf32>
    %144 = vector.broadcast %142 : vector<2x1x32xf32> to vector<2x4x32xf32>
    %145 = arith.mulf %143, %144 : vector<2x4x32xf32>
    %cst_54 = arith.constant dense<0.000000e+00> : vector<4x32xf32>
    %146 = vector.multi_reduction <add>, %145, %cst_54 [0] : vector<2x4x32xf32> to vector<4x32xf32>
    %147 = vector.shape_cast %78 : vector<4x1xi1> to vector<4x1xi1>
    %148 = vector.broadcast %147 : vector<4x1xi1> to vector<4x32xi1>
    %149 = arith.select %148, %140, %80 : vector<4x32xi1>, vector<4x32xf32>
    %c0_55 = arith.constant 0 : index
    %c0_56 = arith.constant 0 : index
    %c0_57 = arith.constant 0 : index
    %c0_58 = arith.constant 0 : index
    %150 = vector.load %arg9[%c0_55, %c0_56, %c0_57, %c0_58] : memref<2x2x4x32xf32, #tpu.memory_space<vmem>>, vector<1x1x4x32xf32>
    %151 = vector.shape_cast %150 : vector<1x1x4x32xf32> to vector<4x32xf32>
    %152 = vector.shape_cast %149 : vector<4x32xf32> to vector<1x1x4x32xf32>
    tpu.vector_store %arg9[%c0_55, %c0_56, %c0_57, %c0_58], %152 {strides = array<i32>} : memref<2x2x4x32xf32, #tpu.memory_space<vmem>>, vector<1x1x4x32xf32>,
    %153 = vector.shape_cast %78 : vector<4x1xi1> to vector<4x1xi1>
    %154 = vector.broadcast %153 : vector<4x1xi1> to vector<4x32xi1>
    %155 = arith.select %154, %146, %82 : vector<4x32xi1>, vector<4x32xf32>
    %c0_59 = arith.constant 0 : index
    %c1_60 = arith.constant 1 : index
    %c0_61 = arith.constant 0 : index
    %c0_62 = arith.constant 0 : index
    %156 = vector.load %arg9[%c0_59, %c1_60, %c0_61, %c0_62] : memref<2x2x4x32xf32, #tpu.memory_space<vmem>>, vector<1x1x4x32xf32>
    %157 = vector.shape_cast %156 : vector<1x1x4x32xf32> to vector<4x32xf32>
    %158 = vector.shape_cast %155 : vector<4x32xf32> to vector<1x1x4x32xf32>
    tpu.vector_store %arg9[%c0_59, %c1_60, %c0_61, %c0_62], %158 {strides = array<i32>} : memref<2x2x4x32xf32, #tpu.memory_space<vmem>>, vector<1x1x4x32xf32>,
    %c1_63 = arith.constant 1 : index
    %c0_64 = arith.constant 0 : index
    %c0_65 = arith.constant 0 : index
    %c0_66 = arith.constant 0 : index
    %159 = vector.load %arg7[%c1_63, %c0_64, %c0_65, %c0_66] : memref<2x2x4x32xf32, #tpu.memory_space<vmem>>, vector<1x1x4x32xf32>
    %160 = vector.shape_cast %159 : vector<1x1x4x32xf32> to vector<4x32xf32>
    %c1_67 = arith.constant 1 : index
    %c1_68 = arith.constant 1 : index
    %c0_69 = arith.constant 0 : index
    %c0_70 = arith.constant 0 : index
    %161 = vector.load %arg7[%c1_67, %c1_68, %c0_69, %c0_70] : memref<2x2x4x32xf32, #tpu.memory_space<vmem>>, vector<1x1x4x32xf32>
    %162 = vector.shape_cast %161 : vector<1x1x4x32xf32> to vector<4x32xf32>
    %163 = vector.shape_cast %74 : vector<2x4xf32> to vector<2x4x1xf32>
    %164 = vector.shape_cast %160 : vector<4x32xf32> to vector<1x4x32xf32>
    %165 = vector.broadcast %163 : vector<2x4x1xf32> to vector<2x4x32xf32>
    %166 = vector.broadcast %164 : vector<1x4x32xf32> to vector<2x4x32xf32>
    %167 = arith.mulf %165, %166 : vector<2x4x32xf32>
    %cst_71 = arith.constant dense<0.000000e+00> : vector<2x32xf32>
    %168 = vector.multi_reduction <add>, %167, %cst_71 [1] : vector<2x4x32xf32> to vector<2x32xf32>
    %169 = vector.shape_cast %74 : vector<2x4xf32> to vector<2x4x1xf32>
    %170 = vector.shape_cast %162 : vector<4x32xf32> to vector<1x4x32xf32>
    %171 = vector.broadcast %169 : vector<2x4x1xf32> to vector<2x4x32xf32>
    %172 = vector.broadcast %170 : vector<1x4x32xf32> to vector<2x4x32xf32>
    %173 = arith.mulf %171, %172 : vector<2x4x32xf32>
    %cst_72 = arith.constant dense<0.000000e+00> : vector<2x32xf32>
    %174 = vector.multi_reduction <add>, %173, %cst_72 [1] : vector<2x4x32xf32> to vector<2x32xf32>
    %cst_73 = arith.constant 0.000000e+00 : f32
    %175 = vector.broadcast %cst_73 : f32 to vector<2x8xf32>
    %176 = tpu.concatenate %134, %175, %168 in 1 : vector<2x32xf32>, vector<2x8xf32>, vector<2x32xf32> -> vector<2x72xf32>
    %177 = arith.truncf %176 : vector<2x72xf32> to vector<2x72xbf16>
    %c1_74 = arith.constant 1 : index
    %c0_75 = arith.constant 0 : index
    %c0_76 = arith.constant 0 : index
    %178 = vector.load %arg4[%c1_74, %c0_75, %c0_76] : memref<2x72x128xbf16, #tpu.memory_space<vmem>>, vector<1x72x128xbf16>
    %179 = vector.shape_cast %178 : vector<1x72x128xbf16> to vector<72x128xbf16>
    %cst_77 = arith.constant dense<0.000000e+00> : vector<2x128xf32>
    %180 = tpu.matmul %177, %179, %cst_77 {dimension_numbers = #tpu.dot_dimension_numbers<[1], [0], [0], [1], [0, 0, 1, 1], [], []>} : vector<2x72xbf16>, vector<72x128xbf16>, vector<2x128xf32> -> vector<2x128xf32>
    %c1_78 = arith.constant 1 : index
    %c0_79 = arith.constant 0 : index
    %c0_80 = arith.constant 0 : index
    %181 = vector.load %arg5[%c1_78, %c0_79, %c0_80] : memref<2x1x128xf32, #tpu.memory_space<vmem>>, vector<1x1x128xf32>
    %182 = vector.shape_cast %181 : vector<1x1x128xf32> to vector<1x128xf32>
    %183 = vector.broadcast %182 : vector<1x128xf32> to vector<2x128xf32>
    %184 = arith.addf %180, %183 : vector<2x128xf32>
    %185 = vector.extract_strided_slice %184 {offsets = [0, 0], sizes = [2, 32], strides = [1, 1]} : vector<2x128xf32> to vector<2x32xf32>
    %cst_81 = arith.constant 0.000000e+00 : f32
    %186 = vector.broadcast %cst_81 : f32 to vector<2x32xf32>
    %187 = arith.subf %186, %185 : vector<2x32xf32>
    %188 = math.exp %187 : vector<2x32xf32>
    %cst_82 = arith.constant 1.000000e+00 : f32
    %189 = vector.broadcast %cst_82 : f32 to vector<2x32xf32>
    %190 = arith.addf %189, %188 : vector<2x32xf32>
    %cst_83 = arith.constant 1.000000e+00 : f32
    %191 = vector.broadcast %cst_83 : f32 to vector<2x32xf32>
    %192 = arith.divf %191, %190 : vector<2x32xf32>
    %193 = vector.extract_strided_slice %184 {offsets = [0, 32], sizes = [2, 32], strides = [1, 1]} : vector<2x128xf32> to vector<2x32xf32>
    %cst_84 = arith.constant 0.000000e+00 : f32
    %194 = vector.broadcast %cst_84 : f32 to vector<2x32xf32>
    %195 = arith.subf %194, %193 : vector<2x32xf32>
    %196 = math.exp %195 : vector<2x32xf32>
    %cst_85 = arith.constant 1.000000e+00 : f32
    %197 = vector.broadcast %cst_85 : f32 to vector<2x32xf32>
    %198 = arith.addf %197, %196 : vector<2x32xf32>
    %cst_86 = arith.constant 1.000000e+00 : f32
    %199 = vector.broadcast %cst_86 : f32 to vector<2x32xf32>
    %200 = arith.divf %199, %198 : vector<2x32xf32>
    %201 = vector.extract_strided_slice %184 {offsets = [0, 64], sizes = [2, 32], strides = [1, 1]} : vector<2x128xf32> to vector<2x32xf32>
    %202 = math.tanh %201 : vector<2x32xf32>
    %203 = vector.extract_strided_slice %184 {offsets = [0, 96], sizes = [2, 32], strides = [1, 1]} : vector<2x128xf32> to vector<2x32xf32>
    %cst_87 = arith.constant 0.000000e+00 : f32
    %204 = vector.broadcast %cst_87 : f32 to vector<2x32xf32>
    %205 = arith.subf %204, %203 : vector<2x32xf32>
    %206 = math.exp %205 : vector<2x32xf32>
    %cst_88 = arith.constant 1.000000e+00 : f32
    %207 = vector.broadcast %cst_88 : f32 to vector<2x32xf32>
    %208 = arith.addf %207, %206 : vector<2x32xf32>
    %cst_89 = arith.constant 1.000000e+00 : f32
    %209 = vector.broadcast %cst_89 : f32 to vector<2x32xf32>
    %210 = arith.divf %209, %208 : vector<2x32xf32>
    %211 = arith.mulf %200, %174 : vector<2x32xf32>
    %212 = arith.mulf %192, %202 : vector<2x32xf32>
    %213 = arith.addf %211, %212 : vector<2x32xf32>
    %214 = math.tanh %213 : vector<2x32xf32>
    %215 = arith.mulf %210, %214 : vector<2x32xf32>
    %216 = vector.shape_cast %74 : vector<2x4xf32> to vector<2x4x1xf32>
    %217 = vector.shape_cast %215 : vector<2x32xf32> to vector<2x1x32xf32>
    %218 = vector.broadcast %216 : vector<2x4x1xf32> to vector<2x4x32xf32>
    %219 = vector.broadcast %217 : vector<2x1x32xf32> to vector<2x4x32xf32>
    %220 = arith.mulf %218, %219 : vector<2x4x32xf32>
    %cst_90 = arith.constant dense<0.000000e+00> : vector<4x32xf32>
    %221 = vector.multi_reduction <add>, %220, %cst_90 [0] : vector<2x4x32xf32> to vector<4x32xf32>
    %222 = vector.shape_cast %74 : vector<2x4xf32> to vector<2x4x1xf32>
    %223 = vector.shape_cast %213 : vector<2x32xf32> to vector<2x1x32xf32>
    %224 = vector.broadcast %222 : vector<2x4x1xf32> to vector<2x4x32xf32>
    %225 = vector.broadcast %223 : vector<2x1x32xf32> to vector<2x4x32xf32>
    %226 = arith.mulf %224, %225 : vector<2x4x32xf32>
    %cst_91 = arith.constant dense<0.000000e+00> : vector<4x32xf32>
    %227 = vector.multi_reduction <add>, %226, %cst_91 [0] : vector<2x4x32xf32> to vector<4x32xf32>
    %228 = vector.shape_cast %78 : vector<4x1xi1> to vector<4x1xi1>
    %229 = vector.broadcast %228 : vector<4x1xi1> to vector<4x32xi1>
    %230 = arith.select %229, %221, %160 : vector<4x32xi1>, vector<4x32xf32>
    %c1_92 = arith.constant 1 : index
    %c0_93 = arith.constant 0 : index
    %c0_94 = arith.constant 0 : index
    %c0_95 = arith.constant 0 : index
    %231 = vector.load %arg9[%c1_92, %c0_93, %c0_94, %c0_95] : memref<2x2x4x32xf32, #tpu.memory_space<vmem>>, vector<1x1x4x32xf32>
    %232 = vector.shape_cast %231 : vector<1x1x4x32xf32> to vector<4x32xf32>
    %233 = vector.shape_cast %230 : vector<4x32xf32> to vector<1x1x4x32xf32>
    tpu.vector_store %arg9[%c1_92, %c0_93, %c0_94, %c0_95], %233 {strides = array<i32>} : memref<2x2x4x32xf32, #tpu.memory_space<vmem>>, vector<1x1x4x32xf32>,
    %234 = vector.shape_cast %78 : vector<4x1xi1> to vector<4x1xi1>
    %235 = vector.broadcast %234 : vector<4x1xi1> to vector<4x32xi1>
    %236 = arith.select %235, %227, %162 : vector<4x32xi1>, vector<4x32xf32>
    %c1_96 = arith.constant 1 : index
    %c1_97 = arith.constant 1 : index
    %c0_98 = arith.constant 0 : index
    %c0_99 = arith.constant 0 : index
    %237 = vector.load %arg9[%c1_96, %c1_97, %c0_98, %c0_99] : memref<2x2x4x32xf32, #tpu.memory_space<vmem>>, vector<1x1x4x32xf32>
    %238 = vector.shape_cast %237 : vector<1x1x4x32xf32> to vector<4x32xf32>
    %239 = vector.shape_cast %236 : vector<4x32xf32> to vector<1x1x4x32xf32>
    tpu.vector_store %arg9[%c1_96, %c1_97, %c0_98, %c0_99], %239 {strides = array<i32>} : memref<2x2x4x32xf32, #tpu.memory_space<vmem>>, vector<1x1x4x32xf32>,
    %cst_100 = arith.constant 1.000000e+00 : f32
    %240 = vector.broadcast %cst_100 : f32 to vector<2x1xf32>
    %241 = tpu.concatenate %215, %240 in 1 : vector<2x32xf32>, vector<2x1xf32> -> vector<2x33xf32>
    %242 = arith.truncf %241 : vector<2x33xf32> to vector<2x33xbf16>
    %c0_101 = arith.constant 0 : index
    %c0_102 = arith.constant 0 : index
    %243 = vector.load %arg6[%c0_101, %c0_102] : memref<33x8xbf16, #tpu.memory_space<vmem>>, vector<33x8xbf16>
    %cst_103 = arith.constant dense<0.000000e+00> : vector<2x8xf32>
    %244 = tpu.matmul %242, %243, %cst_103 {dimension_numbers = #tpu.dot_dimension_numbers<[1], [0], [0], [1], [0, 0, 1, 1], [], []>} : vector<2x33xbf16>, vector<33x8xbf16>, vector<2x8xf32> -> vector<2x8xf32>
    %245 = math.tanh %244 : vector<2x8xf32>
    %cst_104 = arith.constant 0.000000e+00 : f32
    %246 = vector.broadcast %cst_104 : f32 to vector<2x104xf32>
    %247 = tpu.concatenate %245, %39, %53, %246 in 1 : vector<2x8xf32>, vector<2x8xf32>, vector<2x8xf32>, vector<2x104xf32> -> vector<2x128xf32>
    %c0_105 = arith.constant 0 : index
    %c0_106 = arith.constant 0 : index
    %248 = vector.load %arg8[%c0_105, %c0_106] : memref<2x128xf32, #tpu.memory_space<vmem>>, vector<2x128xf32>
    tpu.vector_store %arg8[%c0_105, %c0_106], %247 {strides = array<i32>} : memref<2x128xf32, #tpu.memory_space<vmem>>, vector<2x128xf32>,
    return
  }
}

</mosaic_0001>

<bundles_post_ra>
// kernel: dual_attention_decoder_forward.1
= control target key start
LH: loop header
LB: loop body
LE: loop exit
PB: predicated region body
PF: predicated region fallthrough
CT: control target
= control target key end

     0   :  { %v1213_v0 = vmov 0.0   ;;  %vm1214_vm0 = vmmov 0   ;;  %vm57_vm1 = vcmask 130048   ;;  %vm118_vm2 = vcmask 1043456   ;;  %s1220_s27 = smov 24   ;;  %s1221_s15 = smov 16   ;;  %s1622_s3 = inlined_call_operand.vmem [shape: bf16[25,16], index: 3, kind: input, shape index: {}]   ;;  %s1623_s1 = inlined_call_operand.vmem [shape: bf16[2,16,16], index: 1, kind: input, shape index: {}]   ;;  %s1624_s0 = inlined_call_operand.vmem [shape: s32[2,3], index: 0, kind: input, shape index: {}]   ;;  %s1625_s2 = inlined_call_operand.vmem [shape: bf16[2,16], index: 2, kind: input, shape index: {}]   ;;  %s1626_s6 = inlined_call_operand.vmem [shape: bf16[33,8], index: 6, kind: input, shape index: {}]   ;;  %s1627_s4 = inlined_call_operand.vmem [shape: bf16[2,72,128], index: 4, kind: input, shape index: {}]   ;;  %s1628_s7 = inlined_call_operand.vmem [shape: f32[2,2,4,32], index: 7, kind: input, shape index: {}, may-alias: {7,9}]   ;;  %s1629_s5 = inlined_call_operand.vmem [shape: f32[2,1,128], index: 5, kind: input, shape index: {}]   ;;  %s1630_s9 = inlined_call_operand.vmem [shape: f32[2,2,4,32], index: 9, kind: output, shape index: {1}, may-alias: {7,9}]   ;;  %s1631_s8 = inlined_call_operand.vmem [shape: f32[2,128], index: 8, kind: output, shape index: {0}]  }
   0x1   :  { %1105 = vmatprep.subr.bf16.mxu0 %v1213_v0  ;;  %1115 = vmatprep.mubr.msk.bf16.mxu0 %vm1214_vm0, %v1213_v0  ;;  %v1161_v1 = vld [vmem:[%s1622_s3] sm:$0xff]   ;;  %v1291_v3 = vld [vmem:[%s1623_s1 + $0x8] sm:$0xff]   ;;  %v1215_v5 = vmov 2   ;;  %vm114_vm3 = vcmask 64512   ;;  %v1216_v9 = vmov 1   ;;  %v166_v12 = vlaneseq  ;;  %s1222_s16 = smov 40  }
   0x2   :  { %v1286_v2 = vld [vmem:[%s1623_s1] sm:$0xff]   ;;  %v38_v4 = vld [vmem:[%s1622_s3 + $0x8] sm:$0xf]  ;;  %1157 = vset.pattern.permute.xlu1 %v1215_v5  ;;  %1093 = vmatprep.subr.bf16.mxu1 %v1161_v1  ;;  %v1217_v10 = vmov 1966171168   ;;  %vm244_vm4 = vcmask 1041409  }
   0x3   :  { %v1299_v6 = vld [vmem:[%s1624_s0] sm:$0x3]  ;;  %1094 = vmatpush3.bf16.msra.mxu1 %v1161_v1  ;;  %1095 = vmatprep.mubr.msk.bf16.mxu1 %vm57_vm1, %v1286_v2  ;;  %v120_v7 = vsel %vm118_vm2, %v38_v4, 0  ;;  %v164_v11 = vunpack.c.l.s4 %v1217_v10  ;;  %v1317_v16 = vshrl.u32 %v166_v12, 7  ;;  %v39_v33 = vld [vmem:[%s1622_s3 + $0xc] sm:$0x1] }
   0x4   :  { %231 = vperm.xlu1 %1157, %v1299_v6   ;;  %1099 = vmatprep.subr.bf16.mxu1 %v1213_v0  ;;  %v113_v8 = vld [vmem:[%s1625_s2] sm:$0x1]  ;;  %v40_v36 = vunpack.c.l.bf16 %v39_v33  ;;  %v1339_v50 = vand.u32 127, %v166_v12  ;;  %vm248_vm6 = vcmask 58368   ;;  %vm406_vm9 = vcmask 257024   ;;  %s1223_s20 = smov 64  }
   0x5   :  { %1158 = vset.pattern.permute.xlu0 %v1216_v9  ;;  %v165_v15 = vunpack.c.0.s8 %v164_v11  ;;  %v1324_v22 = vsub.s32 0, %v1317_v16  ;;  %vm374_vm10 = vcmask 261120   ;;  %vm443_vm11 = vcmask 326656   ;;  %s1224_s21 = smov 32   ;;  %s1225_s13 = smov 96  }
   0x6   :  { %1096 = vmatmul.mubr.msk.bf16.vlgmr.msra.gmra.mrb[0].mxu1 %vm57_vm1, %v1291_v3  ;;  %v238_v52 = vsub.s32 %v1339_v50, %v1317_v16  ;;  %vm489_vm12 = vcmask 588800   ;;  %vm963_vm13 = vcmask 1040384   ;;  %s1226_s1 = smov 8   ;;  %vm601_vm14 = vcmask 1044224  }
   0x7   :  { %1100 = vmatpush3.bf16.msra.mxu1 %v120_v7  ;;  %1101 = vmatprep.mubr.msk.bf16.mxu1 %vm1214_vm0, %v1213_v0  ;;  %v1320_v19 = vsub.s32 %v165_v15, %v1317_v16  ;;  %v206_v37 = vrot.slane %v40_v36, %v1324_v22  ;;  %v1218_v7 = vmov 0  }
   0x8   :  { %1119 = vmatprep.subr.bf16.mxu1 %v1213_v0  ;;  %1159 = vset.pattern.permute.xlu1 %v1218_v7 }
   0xe   :  { %1102 = vmatmul.mubr.msk.bf16.vlgmr.msra.gmra.mrb[4].mxu1 %vm114_vm3, %v113_v8 }
   0xf   :  { %1129 = vmatprep.mubr.msk.bf16.mxu1 %vm1214_vm0, %v1213_v0 }
  0x83   :  { %v232_v53 = vpop.permute.xlu1 %231 }
  0x84   :  { %vm233_vm5 = vcmp.ge.s32.totalorder %v1339_v50, %v232_v53 }
  0xd9   :  { %v1097_v13 = vpop.f32.mrb[0].mxu1 }
  0xda   :  { %v98_v14 = vpop.f32.mrb[1].mxu1 }
  0xdb   :  { %v1098_v17 = vpop.f32.mrb[2].mxu1 }
  0xdc   :  { %v101_v18 = vpop.f32.mrb[3].mxu1 }
  0xe1   :  { %v156_v20 = vpop.f32.mrb[4].mxu1 }
  0xe2   :  { %v169_v21 = vrot.slane %v156_v20, %v1320_v19  ;;  %v1103_v23 = vpop.f32.mrb[5].mxu1  ;;  %v376_v20 = vld [vmem:[%s1624_s0] sm:$0x3] }
  0xe3   :  { %v159_v24 = vpop.f32.mrb[6].mxu1 }
  0xe4   :  { %v170_v25 = vcombine.high %v169_v21, %v169_v21  ;;  %v177_v26 = vrot.slane %v169_v21, %v1320_v19  ;;  %v1104_v27 = vpop.f32.mrb[7].mxu1 }
  0xe6   :  { %v184_v28 = vrot.slane %v170_v25, %v1320_v19  ;;  %v188_v29 = vrot.slane %v177_v26, %v1324_v22 }
  0xe8   :  { %v192_v30 = vrot.slane %v184_v28, %v1324_v22  ;;  %v195_v31 = vadd.f32 %v188_v29, %v98_v14  ;;  %v196_v32 = vadd.f32 %v188_v29, %v101_v18 }
  0xea   :  { %v197_v34 = vadd.f32 %v1097_v13, %v192_v30  ;;  %v198_v35 = vadd.f32 %v1098_v17, %v192_v30  ;;  %1179 = vtanh.f32 %v195_v31  ;;  %v295_v31 = vsub.s32 1, %v1317_v16 }
  0xeb   :  { %1181 = vtanh.f32 %v196_v32  ;;  %v1219_v32 = vmov 1983009808  }
  0xec   :  { %1183 = vtanh.f32 %v197_v34  ;;  %v364_v33 = vunpack.c.l.s4 %v1219_v32 }
  0xed   :  { %1185 = vtanh.f32 %v198_v35 }
  0xee   :  { %v365_v36 = vunpack.c.0.s8 %v364_v33 }
  0xf4   :  { %v1180_v38 = vpop.eup %1179 }
  0xf5   :  { %v1182_v39 = vpop.eup %1181  ;;  %v207_v40 = vmul.f32 %v1180_v38, %v206_v37  ;;  %v350_v38 = vld [vmem:[%s1625_s2] sm:$0x1] }
  0xf6   :  { %v1184_v41 = vpop.eup %1183  ;;  %v208_v42 = vmul.f32 %v1182_v39, %v206_v37 }
  0xf7   :  { %v1186_v43 = vpop.eup %1185  ;;  %v211_v44 = vsel %vm57_vm1, %v207_v40, 0.0  ;;  %v209_v45 = vmul.f32 %v1184_v41, %v206_v37 }
  0xf8   :  { %v214_v46 = vsel %vm57_vm1, %v208_v42, 0.0  ;;  %212 = vadd.xlane.f32.xlu1 %v211_v44  ;;  %v210_v47 = vmul.f32 %v1186_v43, %v206_v37  ;;  %v351_v42 = vunpack.c.l.bf16 %v350_v38  ;;  %v368_v43 = vsub.s32 %v365_v36, %v1317_v16  ;;  %v1167_v16 = vld [vmem:[%s1627_s4 + $0x10] sm:$0xff]  }
  0xf9   :  { %215 = vadd.xlane.f32.xlu0 %v214_v46  ;;  %v217_v49 = vsel %vm57_vm1, %v209_v45, 0.0  ;;  %v1165_v46 = vld [vmem:[%s1627_s4] sm:$0xff]   ;;  %v300_v36 = vunpack.c.l.bf16 %v1286_v2  ;;  %v301_v38 = vunpack.c.l.bf16 %v1291_v3 }
  0xfa   :  { %v220_v48 = vsel %vm57_vm1, %v210_v47, 0.0  ;;  %v369_v45 = vrot.slane %v351_v42, %v368_v43  ;;  %1106 = vmatpush3.bf16.msra.mxu0 %v1165_v46  ;;  %v1166_v47 = vld [vmem:[%s1627_s4 + $0x8] sm:$0xff]  }
  0xfb   :  { %1107 = vmatprep.subr.bf16.mxu0 %v1213_v0 }
  0xfd   :  { %221 = vadd.xlane.f32.xlu0 %v220_v48 }
  0xfe   :  { %1108 = vmatpush3.bf16.msra.mxu0 %v1166_v47 }
  0xff   :  { %1109 = vmatprep.subr.bf16.mxu0 %v1213_v0 }
 0x101   :  { %218 = vadd.xlane.f32.xlu0 %v217_v49  ;;  %v1399_v49 = vld [vmem:[%s1628_s7] sm:$0xf] }
 0x102   :  { %1110 = vmatpush3.bf16.msra.mxu0 %v1167_v16 }
 0x103   :  { %1111 = vmatprep.subr.bf16.mxu0 %v1213_v0 }
 0x117   :  { %227 = vperm.xlu0 %1158, %v1299_v6  }
 0x11b   :  { %1160 = vset.pattern.permute.xlu0 %v1218_v7 }
 0x185   :  { %v213_v61 = vpop.xlane.xlu1 %212 }
 0x186   :  { %v216_v51 = vpop.xlane.xlu0 %215  ;;  %v239_v63 = vrot.slane %v213_v61, %v238_v52 }
 0x187   :  { %v266_v55 = vrot.slane %v216_v51, %v238_v52  ;;  %v332_v51 = vunpack.c.h.bf16 %v1286_v2 }
 0x18a   :  { %v222_v54 = vpop.xlane.xlu0 %221 }
 0x18b   :  { %v270_v56 = vrot.slane %v222_v54, %v238_v52 }
 0x18d   :  { %v271_v57 = vsel %vm244_vm4, %v270_v56, %v266_v55  ;;  %v333_v55 = vunpack.c.h.bf16 %v1291_v3 }
 0x18e   :  { %v273_v58 = vsel %vm233_vm5, -1e+30, %v271_v57  ;;  %v219_v60 = vpop.xlane.xlu0 %218 }
 0x18f   :  { %v274_v59 = vsel %vm248_vm6, %v273_v58, -inf  ;;  %v243_v62 = vrot.slane %v219_v60, %v238_v52 }
 0x190   :  { %275 = vmax.xlane.f32.xlu1 %v274_v59 }
 0x191   :  { %v245_v4 = vsel %vm244_vm4, %v243_v62, %v239_v63  ;;  %v1168_v63 = vld [vmem:[%s1627_s4 + $0x18] sm:$0xff]  }
 0x192   :  { %1112 = vmatpush3.bf16.msra.mxu0 %v1168_v63 }
 0x193   :  { %1113 = vmatprep.subr.bf16.mxu0 %v1213_v0 }
 0x196   :  { %v228_v1 = vpop.permute.xlu0 %227 }
 0x197   :  { %vm229_vm7 = vcmp.ge.s32.totalorder %v1339_v50, %v228_v1 }
 0x198   :  { %v247_v5 = vsel %vm229_vm7, -1e+30, %v245_v4 }
 0x199   :  { %v249_v6 = vsel %vm248_vm6, %v247_v5, -inf }
 0x19a   :  { %250 = vmax.xlane.f32.xlu1 %v249_v6 }
 0x21d   :  { %v276_v8 = vpop.xlane.xlu1 %275 }
 0x21e   :  { %v277_v9 = vsub.f32 %v273_v58, %v276_v8 }
 0x220   :  { %v278_v10 = vmul.f32 1.442695, %v277_v9  ;;  %v1169_v9 = vld [vmem:[%s1627_s4 + $0x20] ss:$0 sps:$4 sm:$0xff]  }
 0x222   :  { %1187 = vpow2.f32 %v278_v10 }
 0x227   :  { %v251_v11 = vpop.xlane.xlu1 %250 }
 0x228   :  { %v252_v12 = vsub.f32 %v247_v5, %v251_v11 }
 0x22a   :  { %v253_v13 = vmul.f32 1.442695, %v252_v12 }
 0x22c   :  { %v1188_v14 = vpop.eup %1187  ;;  %1189 = vpow2.f32 %v253_v13 }
 0x22d   :  { %v280_v15 = vsel %vm248_vm6, %v1188_v14, 0.0 }
 0x22e   :  { %281 = vadd.xlane.f32.xlu1 %v280_v15 }
 0x236   :  { %v1190_v17 = vpop.eup %1189 }
 0x237   :  { %v255_v18 = vsel %vm248_vm6, %v1190_v17, 0.0 }
 0x238   :  { %256 = vadd.xlane.f32.xlu0 %v255_v18 }
 0x23f   :  { %378 = vperm.xlu1 %1159, %v376_v20  }
 0x2bb   :  { %v282_v21 = vpop.xlane.xlu1 %281 }
 0x2bc   :  { %1191 = vrcp.f32 %v282_v21 }
 0x2bf   :  { %v379_v23 = vpop.permute.xlu1 %378 }
 0x2c0   :  { %vm380_vm8 = vcmp.eq.s32.totalorder %v1339_v50, %v379_v23 }
 0x2c1   :  { %v1037_v24 = vsel %vm380_vm8, 1.0, %v1213_v0 }
 0x2c2   :  { %v386_v25 = vrot.slane %v1037_v24, %v1324_v22  ;;  %v393_v39 = vrot.slane %v1037_v24, %v295_v31 }
 0x2c4   :  { %388 = vbcast.lane.b32.xlu1 %v386_v25, 256 }
 0x2c5   :  { %v257_v26 = vpop.xlane.xlu0 %256 }
 0x2c6   :  { %v1192_v27 = vpop.eup %1191  ;;  %1193 = vrcp.f32 %v257_v26 }
 0x2c7   :  { %v284_v28 = vmul.f32 %v1192_v27, %v1188_v14  ;;  %v494_v14 = vsel %vm118_vm2, %v1169_v9, 0 }
 0x2c8   :  { %1114 = vmatpush3.bf16.msra.mxu0 %v494_v14 }
 0x2c9   :  { %v1365_v29 = vsel %vm233_vm5, 0.0, %v284_v28  ;;  %1133 = vmatprep.subr.bf16.mxu0 %v1213_v0 }
 0x2ca   :  { %v321_v30 = vrot.slane %v1365_v29, %v1324_v22  ;;  %v328_v34 = vrot.slane %v1365_v29, %v295_v31 }
 0x2cc   :  { %323 = vbcast.lane.b32.xlu1 %v321_v30, 256 }
 0x2d0   :  { %v1194_v35 = vpop.eup %1193  ;;  %330 = vbcast.lane.b32.xlu1 %v328_v34, 256 }
 0x2d1   :  { %v259_v37 = vmul.f32 %v1194_v35, %v1190_v17 }
 0x2d3   :  { %v1376_v40 = vsel %vm229_vm7, 0.0, %v259_v37 }
 0x2d4   :  { %395 = vbcast.lane.b32.xlu1 %v393_v39, 256  ;;  %v296_v41 = vrot.slane %v1376_v40, %v295_v31  ;;  %v289_v44 = vrot.slane %v1376_v40, %v1324_v22 }
 0x2d6   :  { %298 = vbcast.lane.b32.xlu0 %v296_v41, 256 }
 0x2d8   :  { %291 = vbcast.lane.b32.xlu1 %v289_v44, 256 }
 0x2dc   :  { %370 = vrot.lane.b32.xlu1 %v369_v45, %s1220_s27 }
 0x336   :  { %v1394_v48 = vpop.permute.xlu1 %388 }
 0x337   :  { %v404_v50 = vmul.f32 %v1399_v49, %v1394_v48 }
 0x339   :  { %v407_v52 = vsel %vm406_vm9, %v404_v50, 0.0 }
 0x33a   :  { %v408_v56 = vrot.slane %v407_v52, 4 }
 0x33c   :  { %v409_v62 = vadd.f32 %v408_v56, %v407_v52 }
 0x33e   :  { %v324_v53 = vpop.permute.xlu1 %323  ;;  %v410_v12 = vrot.slane %v409_v62, 2 }
 0x33f   :  { %v334_v54 = vmul.f32 %v332_v51, %v324_v53 }
 0x340   :  { %v411_v21 = vadd.f32 %v410_v12, %v409_v62 }
 0x341   :  { %v336_v57 = vsel %vm57_vm1, %v334_v54, 0.0 }
 0x342   :  { %v337_v58 = vrot.slane %v336_v57, 4  ;;  %v331_v59 = vpop.permute.xlu1 %330  ;;  %v412_v28 = vrot.slane %v411_v21, 1 }
 0x343   :  { %v335_v60 = vmul.f32 %v333_v55, %v331_v59 }
 0x344   :  { %v338_v61 = vadd.f32 %v337_v58, %v336_v57  ;;  %v413_v33 = vadd.f32 %v412_v28, %v411_v21 }
 0x345   :  { %v343_v1 = vsel %vm57_vm1, %v335_v60, 0.0 }
 0x346   :  { %v339_v4 = vrot.slane %v338_v61, 2  ;;  %v344_v5 = vrot.slane %v343_v1, 4  ;;  %v1411_v6 = vpop.permute.xlu1 %395 }
 0x347   :  { %v405_v8 = vmul.f32 %v1399_v49, %v1411_v6 }
 0x348   :  { %v340_v10 = vadd.f32 %v339_v4, %v338_v61  ;;  %v345_v11 = vadd.f32 %v344_v5, %v343_v1  ;;  %v299_v39 = vpop.permute.xlu0 %298  ;;  %v1440_v1 = vld [vmem:[%s1628_s7 + $0x4] sm:$0xf] }
 0x349   :  { %v414_v13 = vsel %vm406_vm9, %v405_v8, 0.0  ;;  %v303_v42 = vmul.f32 %v301_v38, %v299_v39  ;;  %v422_v4 = vmul.f32 %v1440_v1, %v1411_v6  ;;  %v421_v5 = vmul.f32 %v1440_v1, %v1394_v48 }
 0x34a   :  { %v346_v15 = vrot.slane %v345_v11, 2  ;;  %v415_v17 = vrot.slane %v414_v13, 4  ;;  %v341_v18 = vrot.slane %v340_v10, 1  ;;  %v292_v37 = vpop.permute.xlu1 %291 }
 0x34b   :  { %v302_v41 = vmul.f32 %v300_v36, %v292_v37  ;;  %v311_v44 = vsel %vm57_vm1, %v303_v42, 0.0  ;;  %v430_v8 = vsel %vm406_vm9, %v422_v4, 0.0  ;;  %v423_v9 = vsel %vm406_vm9, %v421_v5, 0.0  ;;  %v1461_v42 = vld [vmem:[%s1628_s7 + $0x8] sm:$0xf] }
 0x34c   :  { %v347_v20 = vadd.f32 %v346_v15, %v345_v11  ;;  %v416_v23 = vadd.f32 %v415_v17, %v414_v13  ;;  %v342_v26 = vadd.f32 %v341_v18, %v340_v10  ;;  %v312_v46 = vrot.slane %v311_v44, 4  ;;  %v1039_v13 = vld [vmem:[%s1629_s5] ss:$0 sm:$0xff] }
 0x34d   :  { %v304_v43 = vsel %vm57_vm1, %v302_v41, 0.0  ;;  %v431_v10 = vrot.slane %v430_v8, 4  ;;  %v424_v11 = vrot.slane %v423_v9, 4 }
 0x34e   :  { %v348_v24 = vrot.slane %v347_v20, 1  ;;  %v417_v25 = vrot.slane %v416_v23, 2  ;;  %v305_v45 = vrot.slane %v304_v43, 4  ;;  %v313_v16 = vadd.f32 %v312_v46, %v311_v44  ;;  %v371_v55 = vpop.permute.xlu1 %370 }
 0x34f   :  { %v432_v12 = vadd.f32 %v431_v10, %v430_v8  ;;  %v425_v14 = vadd.f32 %v424_v11, %v423_v9  ;;  %v671_v44 = vmul.f32 %v1461_v42, %v1394_v48 }
 0x350   :  { %v349_v27 = vadd.f32 %v348_v24, %v347_v20  ;;  %v418_v30 = vadd.f32 %v417_v25, %v416_v23  ;;  %v306_v47 = vadd.f32 %v305_v45, %v304_v43  ;;  %v314_v51 = vrot.slane %v313_v16, 2  ;;  %v1470_v45 = vld [vmem:[%s1628_s7 + $0xc] sm:$0xf] }
 0x351   :  { %v433_v20 = vrot.slane %v432_v12, 2  ;;  %v426_v24 = vrot.slane %v425_v14, 2  ;;  %v672_v43 = vmul.f32 %v1461_v42, %v1411_v6 }
 0x352   :  { %v358_v31 = vsel %vm244_vm4, %v349_v27, %v342_v26  ;;  %v419_v32 = vrot.slane %v418_v30, 1  ;;  %v307_v50 = vrot.slane %v306_v47, 2  ;;  %v315_v53 = vadd.f32 %v314_v51, %v313_v16 }
 0x353   :  { %359 = vrot.lane.b32.xlu1 %v358_v31, %s1221_s15  ;;  %v434_v25 = vadd.f32 %v433_v20, %v432_v12  ;;  %v427_v26 = vadd.f32 %v426_v24, %v425_v14  ;;  %v680_v46 = vsel %vm406_vm9, %v672_v43, 0.0  ;;  %v673_v16 = vsel %vm406_vm9, %v671_v44, 0.0  ;;  %v1059_v44 = vld [vmem:[%s1629_s5 + $0x1] ss:$0 sm:$0xff] }
 0x354   :  { %v420_v34 = vadd.f32 %v419_v32, %v418_v30  ;;  %v308_v52 = vadd.f32 %v307_v50, %v306_v47  ;;  %v316_v2 = vrot.slane %v315_v53, 1  ;;  %v688_v47 = vmul.f32 %v1470_v45, %v1411_v6 }
 0x355   :  { %v435_v27 = vrot.slane %v434_v25, 1  ;;  %v428_v28 = vrot.slane %v427_v26, 1  ;;  %v687_v50 = vmul.f32 %v1470_v45, %v1394_v48  ;;  %v681_v51 = vrot.slane %v680_v46, 4 }
 0x356   :  { %v439_v35 = vsel %vm244_vm4, %v420_v34, %v413_v33  ;;  %v309_v54 = vrot.slane %v308_v52, 1  ;;  %v317_v3 = vadd.f32 %v316_v2, %v315_v53  ;;  %v674_v53 = vrot.slane %v673_v16, 4 }
 0x357   :  { %440 = vrot.lane.b32.xlu1 %v439_v35, %s1222_s16  ;;  %v436_v31 = vadd.f32 %v435_v27, %v434_v25  ;;  %v429_v32 = vadd.f32 %v428_v28, %v427_v26  ;;  %v689_v2 = vsel %vm406_vm9, %v687_v50, 0.0  ;;  %v1172_v25 = vld [vmem:[%s1627_s4 + $0x34] sm:$0xff]  }
 0x358   :  { %v310_v56 = vadd.f32 %v309_v54, %v308_v52  ;;  %v696_v52 = vsel %vm406_vm9, %v688_v47, 0.0 }
 0x359   :  { %v545_v33 = vsel %vm244_vm4, %v436_v31, %v429_v32  ;;  %v1174_v32 = vld [vmem:[%s1627_s4 + $0x44] ss:$0 sps:$4 sm:$0xff]  }
 0x35a   :  { %v354_v57 = vsel %vm244_vm4, %v317_v3, %v310_v56  ;;  %v697_v56 = vrot.slane %v696_v52, 4 }
 0x3c5   :  { %v360_v58 = vpop.permute.xlu1 %359 }
 0x3c6   :  { %v373_v59 = vsel %vm57_vm1, %v354_v57, %v360_v58  ;;  %v675_v57 = vadd.f32 %v674_v53, %v673_v16  ;;  %v690_v58 = vrot.slane %v689_v2, 4 }
 0x3c7   :  { %v375_v60 = vsel %vm374_vm10, %v373_v59, %v371_v55  ;;  %v682_v55 = vadd.f32 %v681_v51, %v680_v46 }
 0x3c8   :  { %v691_v4 = vadd.f32 %v690_v58, %v689_v2 }
 0x3c9   :  { %v441_v61 = vpop.permute.xlu1 %440 }
 0x3ca   :  { %v444_v62 = vsel %vm443_vm11, %v375_v60, %v441_v61  ;;  %v683_v61 = vrot.slane %v682_v55, 2  ;;  %v692_v10 = vrot.slane %v691_v4, 2 }
 0x3cb   :  { %v445_v63 = vpack.c.bf16 %v444_v62, %v444_v62  ;;  %v698_v62 = vadd.f32 %v697_v56, %v696_v52 }
 0x3cc   :  { %v684_v5 = vadd.f32 %v683_v61, %v682_v55 }
 0x3cd   :  { %1116 = vmatmul.mubr.msk.bf16.vlgmr.msra.gmra.mrb[0].mxu0 %vm489_vm12, %v445_v63  ;;  %v676_v63 = vrot.slane %v675_v57, 2  ;;  %v699_v8 = vrot.slane %v698_v62, 2 }
 0x3ce   :  { %1139 = vmatprep.mubr.msk.bf16.mxu0 %vm1214_vm0, %v1213_v0  ;;  %v685_v11 = vrot.slane %v684_v5, 1  ;;  %vm640_vm0 = vcmask 519424  }
 0x3cf   :  { %v677_v9 = vadd.f32 %v676_v63, %v675_v57  ;;  %v700_v12 = vadd.f32 %v699_v8, %v698_v62  ;;  %v1175_v63 = vld [vmem:[%s1626_s6] sm:$0xff]   ;;  %v965_v8 = vsel %vm963_vm13, 65535, %v1218_v7 }
 0x3d0   :  { %v686_v20 = vadd.f32 %v685_v11, %v684_v5  ;;  %1134 = vmatpush3.bf16.msra.mxu0 %v1175_v63  ;;  %v1176_v5 = vld [vmem:[%s1626_s6 + $0x8] sm:$0xff]  }
 0x3d1   :  { %v678_v14 = vrot.slane %v677_v9, 1  ;;  %1135 = vmatprep.subr.bf16.mxu0 %v1213_v0 }
 0x3d4   :  { %1136 = vmatpush3.bf16.msra.mxu0 %v1176_v5 }
 0x3d5   :  { %1137 = vmatprep.subr.bf16.mxu0 %v1213_v0 }
 0x4a0   :  { %v530_v15 = vpop.f32.mrb[0].mxu0 }
 0x4a1   :  { %v531_v17 = vadd.f32 %v1039_v13, %v530_v15  ;;  %v1117_v18 = vpop.f32.mrb[1].mxu0  ;;  %v1170_v13 = vld [vmem:[%s1627_s4 + $0x24] sm:$0xff]   ;;  %v693_v15 = vadd.f32 %v692_v10, %v691_v4  ;;  %v1164_v4 = vld [vmem:[%s1626_s6 + $0x10] ss:$0 sps:$4 sm:$0x11]  }
 0x4a2   :  { %v533_v21 = vpop.f32.mrb[2].mxu0  ;;  %1120 = vmatpush3.bf16.msra.mxu1 %v1170_v13 }
 0x4a3   :  { %1195 = vtanh.f32 %v531_v17  ;;  %v1118_v23 = vpop.f32.mrb[3].mxu0  ;;  %v536_v34 = vsub.f32 0.0, %v531_v17  ;;  %v1171_v17 = vld [vmem:[%s1627_s4 + $0x2c] sm:$0xff]   ;;  %1121 = vmatprep.subr.bf16.mxu1 %v1213_v0  ;;  %v701_v21 = vrot.slane %v700_v12, 1  ;;  %v694_v24 = vrot.slane %v693_v15, 1 }
 0x4a4   :  { %v679_v23 = vadd.f32 %v678_v14, %v677_v9  ;;  %v967_v9 = vand.u32 %v1164_v4, %v965_v8 }
 0x4a5   :  { %v537_v35 = vmul.f32 1.442695, %v536_v34  ;;  %v702_v27 = vadd.f32 %v701_v21, %v700_v12  ;;  %v695_v28 = vadd.f32 %v694_v24, %v693_v15 }
 0x4a6   :  { %1122 = vmatpush3.bf16.msra.mxu1 %v1171_v17  ;;  %v708_v26 = vsel %vm244_vm4, %v686_v20, %v679_v23  ;;  %1138 = vmatpush3.bf16.msra.mxu0 %v967_v9 }
 0x4a7   :  { %1197 = vpow2.f32 %v537_v35  ;;  %1123 = vmatprep.subr.bf16.mxu1 %v1213_v0  ;;  %v815_v31 = vsel %vm244_vm4, %v702_v27, %v695_v28  ;;  %vm1020_vm4 = vcmask 195584  }
 0x4aa   :  { %1124 = vmatpush3.bf16.msra.mxu1 %v1172_v25 }
 0x4ab   :  { %1125 = vmatprep.subr.bf16.mxu1 %v1213_v0 }
 0x4ad   :  { %v1196_v30 = vpop.eup %1195 }
 0x4ae   :  { %551 = vrot.lane.b32.xlu1 %v1196_v30, %s1223_s20  ;;  %v1173_v30 = vld [vmem:[%s1627_s4 + $0x3c] sm:$0xff]  }
 0x4af   :  { %1126 = vmatpush3.bf16.msra.mxu1 %v1173_v30 }
 0x4b0   :  { %1127 = vmatprep.subr.bf16.mxu1 %v1213_v0  ;;  %v398_v0 = vsel %vm118_vm2, %v1411_v6, 0.0 }
 0x4b1   :  { %v1198_v36 = vpop.eup %1197 }
 0x4b2   :  { %546 = vrot.lane.b32.xlu1 %v545_v33, %s1224_s21  ;;  %v539_v37 = vadd.f32 1.0, %v1198_v36  ;;  %v764_v33 = vsel %vm118_vm2, %v1174_v32, 0 }
 0x4b3   :  { %1128 = vmatpush3.bf16.msra.mxu1 %v764_v33 }
 0x4b4   :  { %1199 = vrcp.f32 %v539_v37 }
 0x4be   :  { %v1454_v38 = vpop.eup %1199 }
 0x520   :  { %v552_v39 = vpop.permute.xlu1 %551 }
 0x521   :  { %v554_v41 = vmul.f32 %v1454_v38, %v552_v39 }
 0x523   :  { %556 = vrot.lane.b32.xlu0 %v554_v41, %s1224_s21 }
 0x524   :  { %v547_v54 = vpop.permute.xlu1 %546 }
 0x525   :  { %v549_v3 = vmul.f32 %v1454_v38, %v547_v54 }
 0x595   :  { %v557_v59 = vpop.permute.xlu0 %556 }
 0x596   :  { %v1481_v60 = vadd.f32 %v557_v59, %v549_v3 }
 0x598   :  { %1201 = vtanh.f32 %v1481_v60 }
 0x5a2   :  { %v1202_v18 = vpop.eup %1201 }
 0x5a3   :  { %562 = vrot.lane.b32.xlu1 %v1202_v18, %s1223_s20 }
 0x5a7   :  { %709 = vrot.lane.b32.xlu1 %v708_v26, %s1222_s16 }
 0x5ab   :  { %816 = vrot.lane.b32.xlu1 %v815_v31, %s1224_s21 }
 0x615   :  { %v563_v34 = vpop.permute.xlu1 %562 }
 0x616   :  { %v565_v35 = vmul.f32 %v1454_v38, %v563_v34 }
 0x618   :  { %703 = vrot.lane.b32.xlu0 %v565_v35, %s1224_s21 }
 0x619   :  { %v710_v37 = vpop.permute.xlu1 %709 }
 0x61d   :  { %v817_v57 = vpop.permute.xlu1 %816 }
 0x68a   :  { %v704_v36 = vpop.permute.xlu0 %703 }
 0x68b   :  { %v712_v39 = vsel %vm374_vm10, %v704_v36, 0.0 }
 0x68c   :  { %v713_v41 = vsel %vm443_vm11, %v712_v39, %v710_v37 }
 0x68d   :  { %v714_v43 = vpack.c.bf16 %v713_v41, %v713_v41  ;;  %v612_v41 = vrot.slane %v1481_v60, %v1320_v19 }
 0x68f   :  { %1130 = vmatmul.mubr.msk.bf16.vlgmr.msra.gmra.mrb[8].mxu1 %vm489_vm12, %v714_v43 }
 0x762   :  { %v800_v46 = vpop.f32.mrb[8].mxu1 }
 0x763   :  { %v801_v47 = vadd.f32 %v1059_v44, %v800_v46  ;;  %v1131_v16 = vpop.f32.mrb[9].mxu1 }
 0x764   :  { %v803_v50 = vpop.f32.mrb[10].mxu1 }
 0x765   :  { %1203 = vtanh.f32 %v801_v47  ;;  %v1132_v38 = vpop.f32.mrb[11].mxu1  ;;  %v806_v52 = vsub.f32 0.0, %v801_v47  ;;  %v620_v47 = vrot.slane %v612_v41, %v1320_v19 }
 0x767   :  { %v807_v53 = vmul.f32 1.442695, %v806_v52  ;;  %v631_v50 = vrot.slane %v620_v47, %v1324_v22 }
 0x769   :  { %1205 = vpow2.f32 %v807_v53  ;;  %v638_v52 = vmul.f32 %v631_v50, %v1394_v48 }
 0x76f   :  { %v1204_v51 = vpop.eup %1203 }
 0x770   :  { %821 = vrot.lane.b32.xlu0 %v1204_v51, %s1223_s20 }
 0x773   :  { %v1206_v54 = vpop.eup %1205 }
 0x774   :  { %v809_v2 = vadd.f32 1.0, %v1206_v54 }
 0x776   :  { %1207 = vrcp.f32 %v809_v2 }
 0x780   :  { %v1208_v55 = vpop.eup %1207 }
 0x781   :  { %v819_v58 = vmul.f32 %v1208_v55, %v817_v57 }
 0x7e2   :  { %v822_v56 = vpop.permute.xlu0 %821 }
 0x7e3   :  { %v824_v3 = vmul.f32 %v1208_v55, %v822_v56 }
 0x7e5   :  { %826 = vrot.lane.b32.xlu0 %v824_v3, %s1224_s21 }
 0x857   :  { %v827_v59 = vpop.permute.xlu0 %826 }
 0x858   :  { %v829_v61 = vadd.f32 %v827_v59, %v819_v58  ;;  %v641_v58 = vsel %vm640_vm0, %v638_v52, 0.0 }
 0x85a   :  { %1209 = vtanh.f32 %v829_v61  ;;  %v881_v43 = vrot.slane %v829_v61, %v1320_v19 }
 0x85c   :  { %v882_v46 = vcombine.high %v881_v43, %v881_v43  ;;  %v889_v38 = vrot.slane %v881_v43, %v1320_v19 }
 0x85e   :  { %v900_v53 = vrot.slane %v889_v38, %v1324_v22 }
 0x864   :  { %v1210_v62 = vpop.eup %1209 }
 0x865   :  { %832 = vrot.lane.b32.xlu1 %v1210_v62, %s1223_s20 }
 0x869   :  { %647 = vrot.lane.b32.xlu1 %v1399_v49, %s1225_s13  ;;  %v573_v49 = vrot.slane %v565_v35, %v1320_v19 }
 0x86b   :  { %v574_v10 = vcombine.high %v573_v49, %v573_v49  ;;  %v581_v7 = vrot.slane %v573_v49, %v1320_v19 }
 0x86d   :  { %913 = vrot.lane.b32.xlu1 %v1461_v42, %s1225_s13  ;;  %v588_v11 = vrot.slane %v574_v10, %v1320_v19  ;;  %v592_v13 = vrot.slane %v581_v7, %v1324_v22 }
 0x86f   :  { %v596_v12 = vrot.slane %v588_v11, %v1324_v22  ;;  %v599_v14 = vmul.f32 %v592_v13, %v1394_v48 }
 0x871   :  { %1011 = vrot.lane.b32.xlu1 %v1376_v40, %s1226_s1  ;;  %v600_v42 = vmul.f32 %v596_v12, %v1411_v6  ;;  %v397_v40 = vsel %vm118_vm2, %v1394_v48, 0.0  ;;  %v602_v21 = vsel %vm601_vm14, %v599_v14, 0.0  ;;  %vm959_vm2 = vcmask 269312  }
 0x872   :  { %v1548_v17 = vadd.f32 %v398_v0, %v397_v40 }
 0x873   :  { %v603_v18 = vsel %vm601_vm14, %v600_v42, 0.0 }
 0x874   :  { %v604_v24 = vadd.f32 %v603_v18, %v602_v21  ;;  %vm400_vm15 = vcmp.gt.f32.partialorder %v1548_v17, 0.0 }
 0x8d7   :  { %v833_v15 = vpop.permute.xlu1 %832 }
 0x8d8   :  { %v835_v20 = vmul.f32 %v1208_v55, %v833_v15 }
 0x8da   :  { %v843_v23 = vrot.slane %v835_v20, %v1320_v19  ;;  %934 = vrot.lane.b32.xlu0 %v835_v20, %s1224_s21 }
 0x8db   :  { %v648_v25 = vpop.permute.xlu1 %647 }
 0x8dc   :  { %v844_v26 = vcombine.high %v843_v23, %v843_v23  ;;  %v851_v27 = vrot.slane %v843_v23, %v1320_v19  ;;  %v650_v28 = vsel %vm400_vm15, %v604_v24, %v648_v25 }
 0x8dd   :  { %652 = vrot.lane.b32.xlu1 %v650_v28, %s1224_s21 }
 0x8de   :  { %v858_v30 = vrot.slane %v844_v26, %v1320_v19  ;;  %v862_v31 = vrot.slane %v851_v27, %v1324_v22  ;;  %657 = vrot.lane.b32.xlu0 %v1440_v1, %s1224_s21 }
 0x8df   :  { %v914_v39 = vpop.permute.xlu1 %913 }
 0x8e0   :  { %v866_v32 = vrot.slane %v858_v30, %v1324_v22  ;;  %v869_v33 = vmul.f32 %v862_v31, %v1394_v48 }
 0x8e2   :  { %924 = vrot.lane.b32.xlu0 %v1470_v45, %s1224_s21  ;;  %v870_v34 = vmul.f32 %v866_v32, %v1411_v6  ;;  %v871_v35 = vsel %vm601_vm14, %v869_v33, 0.0  ;;  %v613_v45 = vcombine.high %v612_v41, %v612_v41 }
 0x8e3   :  { %v1012_v54 = vpop.permute.xlu1 %1011 }
 0x8e4   :  { %v872_v36 = vsel %vm601_vm14, %v870_v34, 0.0  ;;  %v627_v44 = vrot.slane %v613_v45, %v1320_v19 }
 0x8e5   :  { %v873_v37 = vadd.f32 %v872_v36, %v871_v35 }
 0x8e6   :  { %1015 = vrot.lane.b32.xlu0 %v1365_v29, %s1221_s15  ;;  %v635_v16 = vrot.slane %v627_v44, %v1324_v22  ;;  %v896_v29 = vrot.slane %v882_v46, %v1320_v19  ;;  %v907_v19 = vmul.f32 %v900_v53, %v1394_v48 }
 0x8e7   :  { %v916_v1 = vsel %vm400_vm15, %v873_v37, %v914_v39 }
 0x8e8   :  { %918 = vrot.lane.b32.xlu1 %v916_v1, %s1224_s21  ;;  %v904_v51 = vrot.slane %v896_v29, %v1324_v22  ;;  %v639_v60 = vmul.f32 %v635_v16, %v1411_v6  ;;  %v909_v48 = vsel %vm640_vm0, %v907_v19, 0.0 }
 0x8ea   :  { %v642_v55 = vsel %vm640_vm0, %v639_v60, 0.0  ;;  %v908_v56 = vmul.f32 %v904_v51, %v1411_v6 }
 0x8eb   :  { %v643_v61 = vadd.f32 %v642_v55, %v641_v58 }
 0x8ec   :  { %v910_v62 = vsel %vm640_vm0, %v908_v56, 0.0 }
 0x8ed   :  { %v911_v63 = vadd.f32 %v910_v62, %v909_v48 }
 0x94c   :  { %v935_v2 = vpop.permute.xlu0 %934 }
 0x94d   :  { %v937_v3 = vsel %vm374_vm10, %v935_v2, 1.0 }
 0x94e   :  { %v938_v57 = vpack.c.bf16 %v937_v3, %v937_v3 }
 0x94f   :  { %v653_v59 = vpop.permute.xlu1 %652 }
 0x950   :  { %655 = vst.msk [vmem:[%s1630_s9] sm:$0xf] %vm406_vm9, %v653_v59  ;;  %1140 = vmatmul.mubr.msk.bf16.vlgmr.msra.gmra.mrb[4].mxu0 %vm959_vm2, %v938_v57  ;;  %v658_v22 = vpop.permute.xlu0 %657 }
 0x951   :  { %v660_v6 = vsel %vm400_vm15, %v643_v61, %v658_v22 }
 0x952   :  { %662 = vrot.lane.b32.xlu0 %v660_v6, %s1225_s13 }
 0x954   :  { %v925_v4 = vpop.permute.xlu0 %924 }
 0x955   :  { %v927_v5 = vsel %vm400_vm15, %v911_v63, %v925_v4 }
 0x956   :  { %929 = vrot.lane.b32.xlu0 %v927_v5, %s1225_s13 }
 0x958   :  { %v1016_v9 = vpop.permute.xlu0 %1015 }
 0x95a   :  { %v919_v8 = vpop.permute.xlu1 %918 }
 0x95b   :  { %1066 = vst.msk [vmem:[%s1630_s9 + $0x8] sm:$0xf] %vm406_vm9, %v919_v8 }
 0x9c4   :  { %v663_v49 = vpop.permute.xlu0 %662 }
 0x9c5   :  { %1046 = vst.msk [vmem:[%s1630_s9 + $0x4] sm:$0xf] %vm406_vm9, %v663_v49 }
 0x9c8   :  { %v930_v10 = vpop.permute.xlu0 %929 }
 0x9c9   :  { %1067 = vst.msk [vmem:[%s1630_s9 + $0xc] sm:$0xf] %vm406_vm9, %v930_v10 }
 0xa23   :  { %v1003_v11 = vpop.f32.mrb[4].mxu0 }
 0xa24   :  { %1211 = vtanh.f32 %v1003_v11  ;;  %v1141_v7 = vpop.f32.mrb[5].mxu0 }
 0xa25   :  { %v1006_v12 = vpop.f32.mrb[6].mxu0 }
 0xa26   :  { %v1142_v13 = vpop.f32.mrb[7].mxu0 }
 0xa2e   :  { %v1212_v42 = vpop.eup %1211 }
 0xa2f   :  { %v1018_v0 = vsel %vm114_vm3, %v1212_v42, %v1012_v54 }
 0xa30   :  { %v1019_v14 = vsel %vm57_vm1, %v1018_v0, %v1016_v9 }
 0xa31   :  { %v1021_v40 = vsel %vm1020_vm4, %v1019_v14, 0.0 }
 0xa32   :  { %1022 = vst [vmem:[%s1631_s8] sm:$0x3] %v1021_v40 }

</bundles_post_ra>
